<compile_context>
chip_gen: v6e
topology: v6e:2x2x1
jax: 0.10.0
libtpu: 0.0.40
codegen_flags: <defaults>
</compile_context>

<pallas_src>
import jax
import jax.numpy as jnp
from jax.experimental import pallas as pl
from jax.experimental.pallas import tpu as pltpu


def _mlp_kernel(x_ref, w1_ref, b1_ref, w2_ref, b2_ref, o_ref):
    # x:  [TB, D]   w1: [D, H]   b1: [1, H]   w2: [H, C]   b2: [1, C]   o: [TB, C]
    x = x_ref[...]
    h = jnp.dot(x, w1_ref[...], preferred_element_type=jnp.float32) + b1_ref[...]
    h = jnp.maximum(h, 0.0)  # ReLU; Dropout(0.2) is identity in eval mode.
    y = jnp.dot(h, w2_ref[...], preferred_element_type=jnp.float32) + b2_ref[...]
    o_ref[...] = y.astype(o_ref.dtype)


def _round_up(n, m):
    return ((n + m - 1) // m) * m


def language_classifier_forward(x, w1, b1, w2, b2, *, block_b=4096):
    """Forward pass of LanguageClassifier.

    x:  [B, D] float32
    w1: [D, H], b1: [1, H], w2: [H, C], b2: [1, C]  (weights pre-transposed to [in, out])
    returns [B, C] float32 logits.
    """
    B, D = x.shape
    H = w1.shape[1]
    C = w2.shape[1]

    # Batch tile: as large as possible (amortizes per-step grid overhead) but never
    # bigger than the 8-rounded batch so small batches don't pad excessively.
    TB = min(block_b, _round_up(B, 8))
    B_pad = _round_up(B, TB)

    # Pad batch rows (zeros) so the grid divides evenly.
    if B_pad != B:
        x = jnp.pad(x, ((0, B_pad - B), (0, 0)))

    grid = (B_pad // TB,)

    out = pl.pallas_call(
        _mlp_kernel,
        out_shape=jax.ShapeDtypeStruct((B_pad, C), jnp.float32),
        grid=grid,
        in_specs=[
            pl.BlockSpec((TB, D), lambda i: (i, 0)),    # x: tiled along batch
            pl.BlockSpec((D, H), lambda i: (0, 0)),     # w1: VMEM-resident
            pl.BlockSpec((1, H), lambda i: (0, 0)),     # b1: VMEM-resident
            pl.BlockSpec((H, C), lambda i: (0, 0)),     # w2: VMEM-resident
            pl.BlockSpec((1, C), lambda i: (0, 0)),     # b2: VMEM-resident
        ],
        out_specs=pl.BlockSpec((TB, C), lambda i: (i, 0)),
        compiler_params=pltpu.CompilerParams(
            dimension_semantics=("parallel",),  # shard batch steps across TCs on v7x
            vmem_limit_bytes=64 << 20,
        ),
    )(x, w1, b1, w2, b2)

    # Strip batch padding.
    return out[:B]


def init_params(key, embedding_dim=16, hidden=16, num_languages=3):
    """Deterministic init mimicking nn.Linear default (uniform(-1/sqrt(fan_in), ...))."""
    k1, k2, k3, k4 = jax.random.split(key, 4)
    bound1 = 1.0 / jnp.sqrt(embedding_dim)
    bound2 = 1.0 / jnp.sqrt(hidden)
    # stored as [in, out] (i.e. PyTorch weight.T)
    w1 = jax.random.uniform(k1, (embedding_dim, hidden), jnp.float32, -bound1, bound1)
    b1 = jax.random.uniform(k2, (1, hidden), jnp.float32, -bound1, bound1)
    w2 = jax.random.uniform(k3, (hidden, num_languages), jnp.float32, -bound2, bound2)
    b2 = jax.random.uniform(k4, (1, num_languages), jnp.float32, -bound2, bound2)
    return w1, b1, w2, b2


if __name__ == "__main__":
    key = jax.random.PRNGKey(0)
    k_x, k_p = jax.random.split(key)

    B, D, H, C = 8, 16, 16, 3
    x = jax.random.normal(k_x, (B, D), dtype=jnp.float32)
    w1, b1, w2, b2 = init_params(k_p, embedding_dim=D, hidden=H, num_languages=C)

    out = language_classifier_forward(x, w1, b1, w2, b2)
    out = jax.block_until_ready(out)

    # Pure-JAX reference check of the same math.
    ref = jnp.maximum(x @ w1 + b1, 0.0) @ w2 + b2
    assert out.shape == (B, C)
    assert jnp.allclose(out, ref, atol=1e-5, rtol=1e-5)

    # Also exercise a batch large enough to hit the multi-step grid / padding path.
    B_big = 2 * 4096 + 17  # non-multiple of the tile to exercise batch padding
    x_big = jax.random.normal(jax.random.PRNGKey(1), (B_big, D), dtype=jnp.float32)
    out_big = jax.block_until_ready(language_classifier_forward(x_big, w1, b1, w2, b2))
    ref_big = jnp.maximum(x_big @ w1 + b1, 0.0) @ w2 + b2
    assert out_big.shape == (B_big, C)
    assert jnp.allclose(out_big, ref_big, atol=1e-5, rtol=1e-5)

    print("KERNEL_OK")
</pallas_src>

<mosaic_0001>
module attributes {stable_mosaic.version = 11 : i64} {
  func.func @_mlp_kernel(%arg0: i32, %arg1: memref<8x16xf32, #tpu.memory_space<vmem>>, %arg2: memref<16x16xf32, #tpu.memory_space<vmem>>, %arg3: memref<1x16xf32, #tpu.memory_space<vmem>>, %arg4: memref<16x3xf32, #tpu.memory_space<vmem>>, %arg5: memref<1x3xf32, #tpu.memory_space<vmem>>, %arg6: memref<8x3xf32, #tpu.memory_space<vmem>>) attributes {dimension_semantics = [#tpu.dimension_semantics<parallel>], iteration_bounds = array<i64: 1>, scalar_prefetch = 0 : i64, scratch_operands = 0 : i64, tpu.core_type = #tpu.core_type<tc>, window_params = [{transform_indices = @transform_0, window_bounds = array<i64: 8, 16>}, {pipeline_mode = #tpu.pipeline_mode<synchronous>, transform_indices = @transform_1, window_bounds = array<i64: 16, 16>}, {pipeline_mode = #tpu.pipeline_mode<synchronous>, transform_indices = @transform_2, window_bounds = array<i64: 1, 16>}, {pipeline_mode = #tpu.pipeline_mode<synchronous>, transform_indices = @transform_3, window_bounds = array<i64: 16, 3>}, {pipeline_mode = #tpu.pipeline_mode<synchronous>, transform_indices = @transform_4, window_bounds = array<i64: 1, 3>}, {transform_indices = @transform_5, window_bounds = array<i64: 8, 3>}]} {
    %c0 = arith.constant 0 : index
    %c0_0 = arith.constant 0 : index
    %0 = vector.load %arg1[%c0, %c0_0] : memref<8x16xf32, #tpu.memory_space<vmem>>, vector<8x16xf32>
    %c0_1 = arith.constant 0 : index
    %c0_2 = arith.constant 0 : index
    %1 = vector.load %arg2[%c0_1, %c0_2] : memref<16x16xf32, #tpu.memory_space<vmem>>, vector<16x16xf32>
    %cst = arith.constant dense<0.000000e+00> : vector<8x16xf32>
    %2 = tpu.matmul %0, %1, %cst {dimension_numbers = #tpu.dot_dimension_numbers<[1], [0], [0], [1], [0, 0, 1, 1], [], []>} : vector<8x16xf32>, vector<16x16xf32>, vector<8x16xf32> -> vector<8x16xf32>
    %c0_3 = arith.constant 0 : index
    %c0_4 = arith.constant 0 : index
    %3 = vector.load %arg3[%c0_3, %c0_4] : memref<1x16xf32, #tpu.memory_space<vmem>>, vector<1x16xf32>
    %4 = vector.broadcast %3 : vector<1x16xf32> to vector<8x16xf32>
    %5 = arith.addf %2, %4 : vector<8x16xf32>
    %cst_5 = arith.constant 0.000000e+00 : f32
    %6 = vector.broadcast %cst_5 : f32 to vector<8x16xf32>
    %7 = arith.maximumf %5, %6 : vector<8x16xf32>
    %c0_6 = arith.constant 0 : index
    %c0_7 = arith.constant 0 : index
    %8 = vector.load %arg4[%c0_6, %c0_7] : memref<16x3xf32, #tpu.memory_space<vmem>>, vector<16x3xf32>
    %cst_8 = arith.constant dense<0.000000e+00> : vector<8x3xf32>
    %9 = tpu.matmul %7, %8, %cst_8 {dimension_numbers = #tpu.dot_dimension_numbers<[1], [0], [0], [1], [0, 0, 1, 1], [], []>} : vector<8x16xf32>, vector<16x3xf32>, vector<8x3xf32> -> vector<8x3xf32>
    %c0_9 = arith.constant 0 : index
    %c0_10 = arith.constant 0 : index
    %10 = vector.load %arg5[%c0_9, %c0_10] : memref<1x3xf32, #tpu.memory_space<vmem>>, vector<1x3xf32>
    %11 = vector.broadcast %10 : vector<1x3xf32> to vector<8x3xf32>
    %12 = arith.addf %9, %11 : vector<8x3xf32>
    %c0_11 = arith.constant 0 : index
    %c0_12 = arith.constant 0 : index
    %13 = vector.load %arg6[%c0_11, %c0_12] : memref<8x3xf32, #tpu.memory_space<vmem>>, vector<8x3xf32>
    tpu.vector_store %arg6[%c0_11, %c0_12], %12 {strides = array<i32>} : memref<8x3xf32, #tpu.memory_space<vmem>>, vector<8x3xf32>,
    return
  }
  func.func @transform_0(%arg0: i32) -> (i32, i32) {
    %c0_i32 = arith.constant 0 : i32
    %c0_i32_0 = arith.constant 0 : i32
    return %arg0, %c0_i32 : i32, i32
  }
  func.func @transform_1(%arg0: i32) -> (i32, i32) {
    %c0_i32 = arith.constant 0 : i32
    %c0_i32_0 = arith.constant 0 : i32
    %c0_i32_1 = arith.constant 0 : i32
    return %c0_i32, %c0_i32_0 : i32, i32
  }
  func.func @transform_2(%arg0: i32) -> (i32, i32) {
    %c0_i32 = arith.constant 0 : i32
    %c0_i32_0 = arith.constant 0 : i32
    %c0_i32_1 = arith.constant 0 : i32
    return %c0_i32, %c0_i32_0 : i32, i32
  }
  func.func @transform_3(%arg0: i32) -> (i32, i32) {
    %c0_i32 = arith.constant 0 : i32
    %c0_i32_0 = arith.constant 0 : i32
    %c0_i32_1 = arith.constant 0 : i32
    return %c0_i32, %c0_i32_0 : i32, i32
  }
  func.func @transform_4(%arg0: i32) -> (i32, i32) {
    %c0_i32 = arith.constant 0 : i32
    %c0_i32_0 = arith.constant 0 : i32
    %c0_i32_1 = arith.constant 0 : i32
    return %c0_i32, %c0_i32_0 : i32, i32
  }
  func.func @transform_5(%arg0: i32) -> (i32, i32) {
    %c0_i32 = arith.constant 0 : i32
    %c0_i32_0 = arith.constant 0 : i32
    return %arg0, %c0_i32 : i32, i32
  }
}

</mosaic_0001>

<bundles_post_ra>
// kernel: tpu_custom_call.1
= control target key start
LH: loop header
LB: loop body
LE: loop exit
PB: predicated region body
PF: predicated region fallthrough
CT: control target
= control target key end

     0   :  { %10 = vsyncpa [#allocation3], 0  ;;  %s255_s18 = smov [#allocation2]   ;;  %s312_s0 = inlined_call_operand.hbm [shape: f32[8,16], index: 0, kind: input, shape index: {}]   ;;  %s313_s1 = inlined_call_operand.vmem [shape: f32[16,16], index: 1, kind: input, shape index: {}]   ;;  %s314_s2 = inlined_call_operand.vmem [shape: f32[1,16], index: 2, kind: input, shape index: {}]   ;;  %s315_s3 = inlined_call_operand.vmem [shape: f32[16,3], index: 3, kind: input, shape index: {}]   ;;  %s316_s4 = inlined_call_operand.vmem [shape: f32[1,3], index: 4, kind: input, shape index: {}]   ;;  %s317_s5 = inlined_call_operand.vmem [shape: f32[8,3], index: 5, kind: output, shape index: {}]  }
   0x1   :  { %s17_s19 = sshll.u32 %s255_s18, 4  ;;  %s18_s19 = int_to_ptr.vmem [resolvable:$true] %s17_s19 }
   0x2   :  { %s241_s20 = scalar_lea.vmem %s18_s19, 128  ;;  %p246_p1 = scmp.lt.s32.totalorder %s18_s19, %s18_s19 }
   0x3   :  { %p242_p0 = scmp.ne.s32.totalorder %s18_s19, %s241_s20  ;;  %p247_p2 = scmp.lt.s32.totalorder %s241_s20, %s241_s20 }
   0x5   :  { %p248_p3 = por %p247_p2, %p246_p1 }
   0x7   :  { %p249_p4 = pnand %p248_p3, %p242_p0 }
   0x9   :  { %252 = shalt.err (!%p249_p4)
}
   0xa   :  { %20 = dma.hbm_to_vmem [thread:$0]  %s312_s0, 128, %s18_s19, [#allocation3]  }
   0xb   :  { %253 = dma.done.wait [#allocation3], 128  }
   0xc   :  { %254 = vsyncadd [#allocation3], 4294967168  ;;  %v256_v0 = vmov 0.0   ;;  %vm257_vm0 = vmmov 0   ;;  %v34_v1 = vld [vmem:[%s313_s1 + $0x8] sm:$0xff]  ;;  %v33_v2 = vld [vmem:[%s313_s1] sm:$0xff] }
   0xd   :  { %216 = vmatprep.subr.mxu0 %v256_v0  ;;  %220 = vmatprep.mubr.msk.f32.mxu0 %vm257_vm0, %v256_v0  ;;  %v32_v3 = vld [vmem:[#allocation2] sm:$0xff]  ;;  %vm42_vm1 = vcmask 130048   ;;  %v118_v4 = vld [vmem:[%s315_s3 + $0x8] sm:$0xff]  ;;  %vm199_vm2 = vcmask 23552  }
   0xe   :  { %223 = vmatprep.subr.mxu1 %v256_v0  ;;  %227 = vmatprep.mubr.msk.f32.mxu1 %vm257_vm0, %v256_v0  ;;  %v117_v5 = vld [vmem:[%s315_s3] sm:$0xff] }
   0xf   :  { %217 = vmatpush3.msra.mxu0 %v34_v1  ;;  %224 = vmatpush3.msra.mxu1 %v118_v4  ;;  %v206_v6 = vld [vmem:[%s314_s2] ss:$0 sm:$0xff] }
  0x10   :  { %218 = vmatprep.subr.mxu0 %v256_v0  ;;  %225 = vmatprep.subr.mxu1 %v256_v0  ;;  %v208_v11 = vld [vmem:[%s316_s4] ss:$0 sm:$0xff] }
  0x11   :  { %219 = vmatpush3.msra.mxu0 %v33_v2  ;;  %226 = vmatpush3.msra.mxu1 %v117_v5 }
  0x12   :  { %221 = vmatmul.mubr.msk.f32.vlgmr.msra.gmra.mxu0 %vm42_vm1, %v32_v3 }
  0xd2   :  { %v112_v7 = vpop.f32.mrf.mxu0 }
  0xd3   :  { %v113_v8 = vadd.f32 %v206_v6, %v112_v7 }
  0xd4   :  { %v222_v9 = vpop.f32.mrf.mxu0 }
  0xd5   :  { %v116_v10 = vmax.f32 %v113_v8, 0.0 }
  0xd7   :  { %228 = vmatmul.mubr.msk.f32.vlgmr.msra.gmra.mxu1 %vm42_vm1, %v116_v10 }
 0x197   :  { %v195_v12 = vpop.f32.mrf.mxu1 }
 0x198   :  { %v196_v13 = vadd.f32 %v208_v11, %v195_v12 }
 0x199   :  { %v229_v14 = vpop.f32.mrf.mxu1 }
 0x19a   :  { %200 = vst.msk [vmem:[%s317_s5] sm:$0xff] %vm199_vm2, %v196_v13 }
 0x19b   :  { %205 = vsyncpa [#allocation3], 1 }

</bundles_post_ra>
